<compile_context>
chip_gen: v7x
topology: tpu7x:2x2x1
jax: 0.10.0
libtpu: 0.0.40
codegen_flags: <defaults>
</compile_context>

<pallas_src>
import jax
import jax.numpy as jnp
from jax.experimental import pallas as pl
from jax.experimental.pallas import tpu as pltpu


def _hbm_copy_kernel(x_hbm_ref, o_hbm_ref, copy_sem):
    # Whole-array HBM->HBM DMA: no grid, no VMEM staging, no per-step overhead.
    cp = pltpu.make_async_copy(x_hbm_ref, o_hbm_ref, copy_sem)
    cp.start()
    cp.wait()


def _hbm_identity_copy(x):
    """Identity copy of `x` via a single HBM->HBM DMA (any shape / dtype / size)."""
    nbytes = x.size * jnp.dtype(x.dtype).itemsize
    return pl.pallas_call(
        _hbm_copy_kernel,
        out_shape=jax.ShapeDtypeStruct(x.shape, x.dtype),
        in_specs=[pl.BlockSpec(memory_space=pl.ANY)],   # raw HBM ref, no auto-DMA
        out_specs=pl.BlockSpec(memory_space=pl.ANY),    # raw HBM ref, no auto-DMA
        scratch_shapes=[pltpu.SemaphoreType.DMA],       # completion semaphore
        cost_estimate=pl.CostEstimate(
            flops=0, transcendentals=0, bytes_accessed=2 * nbytes),
    )(x)


def print_in_shape(x, stop=True):
    """Pallas equivalent of PrintInShape.forward."""
    # Shapes are static in JAX, so the print / raise happen at call/trace time,
    # mirroring `print(io.shape)` in the PyTorch module.
    # TODO(synk): under jax.jit this prints once at trace time, not per step;
    # use jax.debug.print / jax.debug.callback if per-execution printing is needed.
    print(tuple(x.shape))
    if stop:
        raise RuntimeError('Stop to view shape.')
    return _hbm_identity_copy(x)


if __name__ == "__main__":
    key = jax.random.PRNGKey(0)
    # NCHW, small shapes: batch=2, channels=4, spatial=16x16
    x = jax.random.normal(key, (2, 4, 16, 16), dtype=jnp.float32)

    # stop=True branch: must raise RuntimeError (after printing the shape).
    raised = False
    try:
        print_in_shape(x, stop=True)
    except RuntimeError:
        raised = True
    assert raised, "stop=True must raise RuntimeError"

    # stop=False branch: identity pass-through via the HBM->HBM DMA kernel.
    y = jax.block_until_ready(print_in_shape(x, stop=False))
    assert y.shape == x.shape
    assert y.dtype == x.dtype
    assert bool(jnp.array_equal(y, x))

    # Awkward (non-multiple-of-128) shape + different dtype: previously the
    # VMEM-cliff fallback path, now handled by the same DMA with zero VMEM use.
    x_odd = jax.random.normal(key, (3, 5, 7), dtype=jnp.bfloat16)
    y_odd = jax.block_until_ready(print_in_shape(x_odd, stop=False))
    assert y_odd.shape == x_odd.shape and y_odd.dtype == x_odd.dtype
    assert bool(jnp.array_equal(y_odd, x_odd))

    # Larger input (8 MiB f32): one big DMA, still no VMEM pressure.
    x_big = jax.random.normal(key, (8, 64, 32, 32), dtype=jnp.float32)
    y_big = jax.block_until_ready(print_in_shape(x_big, stop=False))
    assert y_big.shape == x_big.shape
    assert bool(jnp.array_equal(y_big, x_big))

    print("KERNEL_OK")
</pallas_src>

<mosaic_0001>
module attributes {stable_mosaic.version = 11 : i64} {
  func.func @_hbm_copy_kernel(%arg0: memref<2x4x16x16xf32, #tpu.memory_space<any>>, %arg1: memref<2x4x16x16xf32, #tpu.memory_space<any>>, %arg2: memref<!tpu.dma_semaphore, #tpu.memory_space<semaphore_mem>>) attributes {dimension_semantics = [], scalar_prefetch = 0 : i64, scratch_operands = 1 : i64, tpu.core_type = #tpu.core_type<tc>} {
    tpu.enqueue_dma source(%arg0 : memref<2x4x16x16xf32, #tpu.memory_space<any>>) target(%arg1 : memref<2x4x16x16xf32, #tpu.memory_space<any>>) target_semaphore(%arg2 : memref<!tpu.dma_semaphore, #tpu.memory_space<semaphore_mem>>)
    tpu.wait_dma2 semaphore(%arg2 : memref<!tpu.dma_semaphore, #tpu.memory_space<semaphore_mem>>) src(%arg0 : memref<2x4x16x16xf32, #tpu.memory_space<any>>) dst(%arg1 : memref<2x4x16x16xf32, #tpu.memory_space<any>>)
    return
  }
}

</mosaic_0001>

<bundles_post_ra>
// kernel: tpu_custom_call.1
= control target key start
LH: loop header
LB: loop body
LE: loop exit
PB: predicated region body
PF: predicated region fallthrough
CT: control target
= control target key end

     0   :  { %s36_s6 = smov [#allocation2]   ;;  %s37_s7 = smov [#allocation3]   ;;  %s55_s0 = inlined_call_operand.hbm [shape: f32[2,4,16,16], index: 0, kind: input, shape index: {}]   ;;  %s56_s1 = inlined_call_operand.hbm [shape: f32[2,4,16,16], index: 1, kind: output, shape index: {}]  }
   0x1   :  { %s38_s8 = smov 0  }
   0x2   :  { %18 = dma.general %s55_s0, 2048, %s56_s1, %s36_s6, %s37_s7, [#allocation4], %s38_s8, 0  }
   0x3   :  { %34 = dma.done.wait [#allocation2], 2048 }
   0x4   :  { %35 = vsyncadd [#allocation2], 4294965248 }
   0x5   :  { %24 = vsyncmov [#allocation2] }
   0x8   :  { %s25_s13 = vpop.sfrf %24 }
   0x9   :  { %p30_p0 = scmp.ne.s32.totalorder %s25_s13, 0 }
   0xb   :  { %29 = shalt.err (%p30_p0)  }

</bundles_post_ra>
